<compile_context>
chip_gen: v7x
topology: tpu7x:2x2x1
jax: 0.10.0
libtpu: 0.0.40
codegen_flags: <defaults>
</compile_context>

<pallas_src>
import functools

import numpy as np
import jax
import jax.numpy as jnp
from jax.experimental import pallas as pl
from jax.experimental.pallas import tpu as pltpu

EPS = 1e-5
_GUARD = 128    # lane guard on each side of a slab window (must be >= PW + 1)
_CPAD = 16      # channel padding (one native bf16 sublane tile)


def _round_up(x, m):
    return (x + m - 1) // m * m


def _vmem_limit_bytes():
    """Generation-aware VMEM cap (~3/4 of physical; 48 MiB on v7x, 96 MiB on v5e/v6e)."""
    cap = 64 * 1024 * 1024
    try:
        info = pltpu.get_tpu_info()
        cap = int(getattr(info, "vmem_capacity_bytes", cap))
    except Exception:
        pass
    return max(32 * 1024 * 1024, min(100 * 1024 * 1024, (cap * 3) // 4))


# ---------------------------------------------------------------------------
# Kernels
# ---------------------------------------------------------------------------
def _stacked_conv(src_ref, w_ref, b_ref, taps, nspan, plane_indexed):
    """3x3 conv as a single (Cout, 9*Cin) @ (9*Cin, nspan) MXU matmul.

    The nine taps are statically-offset lane windows of a zero-guarded flat slab,
    stacked along the contraction axis."""
    parts = []
    for plane, start in taps:
        if plane_indexed:
            parts.append(src_ref[0, plane, :, pl.ds(start, nspan)])
        else:
            parts.append(src_ref[:, pl.ds(start, nspan)])
    rhs = jnp.concatenate(parts, axis=0)                      # (9*Cin, nspan) bf16
    return jnp.dot(w_ref[...], rhs, preferred_element_type=jnp.float32) + b_ref[...]


def _conv1_to_scratch(x_ref, mask_ref, w1_ref, b1_ref, h_ref, taps1, nspan):
    """conv1 + folded BN + ReLU, written into the zero-guarded h scratch slab."""
    y = _stacked_conv(x_ref, w1_ref, b1_ref, taps1, nspan, plane_indexed=True)
    y = jnp.maximum(y, 0.0) * mask_ref[...]       # zero h's border / tail lanes
    c = h_ref.shape[0]
    zeros = jnp.zeros((c, _GUARD), h_ref.dtype)
    h_ref[:, pl.ds(0, _GUARD)] = zeros            # guards feed only discarded lanes
    h_ref[:, pl.ds(_GUARD + nspan, _GUARD)] = zeros
    h_ref[:, pl.ds(_GUARD, nspan)] = y.astype(h_ref.dtype)


def _block_kernel_identity(x_ref, mask_ref, w1_ref, b1_ref, w2_ref, b2_ref,
                           o_ref, h_ref, *, taps1, taps2, nspan, cout):
    _conv1_to_scratch(x_ref, mask_ref, w1_ref, b1_ref, h_ref, taps1, nspan)
    y2 = _stacked_conv(h_ref, w2_ref, b2_ref, taps2, nspan, plane_indexed=False)
    sc = x_ref[0, 0, pl.ds(0, cout), pl.ds(_GUARD, nspan)].astype(jnp.float32)
    o_ref[0] = (y2 + jnp.maximum(sc, 0.0)).astype(o_ref.dtype)


def _block_kernel_proj(x_ref, mask_ref, w1_ref, b1_ref, w2_ref, b2_ref,
                       scs_ref, wsc_ref, bsc_ref, o_ref, h_ref,
                       *, taps1, taps2, nspan):
    _conv1_to_scratch(x_ref, mask_ref, w1_ref, b1_ref, h_ref, taps1, nspan)
    y2 = _stacked_conv(h_ref, w2_ref, b2_ref, taps2, nspan, plane_indexed=False)
    sc = jnp.dot(wsc_ref[...], scs_ref[0],
                 preferred_element_type=jnp.float32) + bsc_ref[...]
    o_ref[0] = (y2 + jnp.maximum(sc, 0.0)).astype(o_ref.dtype)


# ---------------------------------------------------------------------------
# Layout preparation (plain-JAX, single pass over x; no 9x im2col tensor in HBM)
# ---------------------------------------------------------------------------
def _batch_lanes(flat, nb, guard):
    """(N, P, C, span) -> (N//nb, P, C, guard + nb*span + guard)."""
    n, p, c, span = flat.shape
    g = n // nb
    x = flat.reshape(g, nb, p, c, span).transpose(0, 2, 3, 1, 4)
    x = x.reshape(g, p, c, nb * span)
    return jnp.pad(x, ((0, 0), (0, 0), (0, 0), (guard, guard)))


def _prep_conv1_input(xb, stride, span, nb):
    """x (N, Cp, H, W) bf16 -> zero-guarded lane-flattened slab windows + tap table."""
    n, cp, h, w = xb.shape
    if stride == 1:
        pw = w + 2
        body = (h + 2) * pw
        xp = jnp.pad(xb, ((0, 0), (0, 0), (1, 1), (1, 1)))
        flat = jnp.pad(xp.reshape(n, cp, body),
                       ((0, 0), (0, 0), (0, span - body)))[:, None]
        taps = tuple((0, _GUARD + (kh - 1) * pw + (kw - 1))
                     for kh in range(3) for kw in range(3))
    elif stride == 2:
        if h % 2 or w % 2:
            raise NotImplementedError("stride-2 path assumes even H, W")
        ho, wo = h // 2, w // 2
        pwo = wo + 2
        xp = jnp.pad(xb, ((0, 0), (0, 0), (1, 1), (1, 1)))
        planes = []
        for ph in (0, 1):                                  # even/odd spatial phases
            for pc in (0, 1):
                pp = xp[:, :, ph::2, pc::2]                # (N, Cp, Ho+1, Wo+1)
                pp = jnp.pad(pp, ((0, 0), (0, 0), (0, 0), (0, pwo - (wo + 1))))
                pp = pp.reshape(n, cp, (ho + 1) * pwo)
                pp = jnp.pad(pp, ((0, 0), (0, 0), (0, span - (ho + 1) * pwo)))
                planes.append(pp)
        flat = jnp.stack(planes, axis=1)                   # (N, 4, Cp, span)
        taps = tuple((2 * (kh % 2) + (kw % 2),
                      _GUARD + (kh // 2 - 1) * pwo + (kw // 2 - 1))
                     for kh in range(3) for kw in range(3))
    else:
        raise NotImplementedError("BasicBlock only uses stride 1 or 2")
    return _batch_lanes(flat, nb, _GUARD), taps


def _prep_shortcut_src(xb, stride, ho, wo, span, nb):
    """Stride-subsampled x in the output slab layout (unshifted reads, no guards)."""
    n, cp = xb.shape[:2]
    pwo = wo + 2
    xs = xb[:, :, ::stride, ::stride]
    xs = jnp.pad(xs, ((0, 0), (0, 0), (1, 1), (1, pwo - wo - 1)))
    xs = xs.reshape(n, cp, (ho + 2) * pwo)
    xs = jnp.pad(xs, ((0, 0), (0, 0), (0, span - (ho + 2) * pwo)))
    g = n // nb
    return xs.reshape(g, nb, cp, span).transpose(0, 2, 1, 3).reshape(g, cp, nb * span)


def _make_mask(ho, wo, span, nb):
    """Static lane mask selecting valid output pixels within one (tiled) span."""
    pwo = wo + 2
    j = np.arange(span)
    r, c = j // pwo, j % pwo
    m = ((j < (ho + 2) * pwo) & (r >= 1) & (r <= ho)
         & (c >= 1) & (c <= wo)).astype(np.float32)
    return jnp.asarray(np.tile(m, nb))[None, :]


def _fold_w3x3(w_hwio, scale, cin_pad, cout_pad):
    """(3,3,Cin,Cout) HWIO + BN scale -> (Cout_pad, 9*Cin_pad) bf16 tap matrix."""
    _, _, cin, cout = w_hwio.shape
    w = w_hwio * scale[None, None, None, :]
    w = jnp.pad(w, ((0, 0), (0, 0), (0, cin_pad - cin), (0, cout_pad - cout)))
    return jnp.transpose(w, (3, 0, 1, 2)).reshape(cout_pad, 9 * cin_pad).astype(jnp.bfloat16)


def _pad_channels(x, cp):
    c = x.shape[1]
    return x if cp == c else jnp.pad(x, ((0, 0), (0, cp - c), (0, 0), (0, 0)))


def _pick_images_per_step(n, span, cin_p, cmid_p, cout, nph):
    # rough per-image VMEM bytes; the two stacked (9*C, span) operands dominate
    per_img = span * (9 * cin_p * 2 + 9 * cmid_p * 2 + (cmid_p + cout) * 6
                      + 2 * nph * cin_p * 2 + 2 * cout * 2 + cin_p * 2)
    nb = max(1, min(n, (24 * 1024 * 1024) // max(per_img, 1)))
    while nb > 1 and n // nb < 2:      # keep >= 2 grid steps for dual-TC chips
        nb -= 1
    while nb > 1 and n % nb:
        nb -= 1
    return nb


# ---------------------------------------------------------------------------
# Fused BasicBlock forward
# ---------------------------------------------------------------------------
def basic_block_forward(x, params, *, stride, images_per_step=None):
    """BasicBlock forward.  x: (N, C_in, H, W) float32 (PyTorch NCHW)."""
    n, cin, h, w = x.shape
    cmid = params["w1"].shape[3]
    cout = params["w2"].shape[3]
    proj = "wsc" in params
    ho, wo = h // stride, w // stride
    pwo = wo + 2
    if pwo + 1 > _GUARD:
        raise NotImplementedError("spatial width too large for the 128-lane guard")
    body = (ho + 2) * pwo
    span = _round_up(body, 128)
    cin_p = _round_up(cin, _CPAD)
    cmid_p = _round_up(cmid, _CPAD)
    nph = 1 if stride == 1 else 4
    nb = images_per_step or _pick_images_per_step(n, span, cin_p, cmid_p, cout, nph)
    if n % nb:
        nb = 1
    nspan = nb * span
    lx = 2 * _GUARD + nspan
    grid = (n // nb,)

    xb = _pad_channels(x.astype(jnp.bfloat16), cin_p)
    x_win, taps1 = _prep_conv1_input(xb, stride, span, nb)
    taps2 = tuple((0, _GUARD + (kh - 1) * pwo + (kw - 1))
                  for kh in range(3) for kw in range(3))
    mask = _make_mask(ho, wo, span, nb)

    w1 = _fold_w3x3(params["w1"], params["s1"], cin_p, cmid_p)
    b1 = jnp.pad(params["b1"], (0, cmid_p - cmid)).astype(jnp.float32).reshape(cmid_p, 1)
    w2 = _fold_w3x3(params["w2"], params["s2"], cmid_p, cout)
    b2 = params["b2"].astype(jnp.float32).reshape(cout, 1)

    in_specs = [
        pl.BlockSpec((1, nph, cin_p, lx), lambda g: (g, 0, 0, 0)),
        pl.BlockSpec((1, nspan), lambda g: (0, 0)),
        pl.BlockSpec((cmid_p, 9 * cin_p), lambda g: (0, 0)),
        pl.BlockSpec((cmid_p, 1), lambda g: (0, 0)),
        pl.BlockSpec((cout, 9 * cmid_p), lambda g: (0, 0)),
        pl.BlockSpec((cout, 1), lambda g: (0, 0)),
    ]
    args = [x_win, mask, w1, b1, w2, b2]

    if proj:
        scs = _prep_shortcut_src(xb, stride, ho, wo, span, nb)
        wsc = params["wsc"][0, 0] * params["ssc"][None, :]
        wsc = jnp.pad(wsc, ((0, cin_p - cin), (0, 0))).T.astype(jnp.bfloat16)
        bsc = params["bsc"].astype(jnp.float32).reshape(cout, 1)
        in_specs += [
            pl.BlockSpec((1, cin_p, nspan), lambda g: (g, 0, 0)),
            pl.BlockSpec((cout, cin_p), lambda g: (0, 0)),
            pl.BlockSpec((cout, 1), lambda g: (0, 0)),
        ]
        args += [scs, wsc, bsc]
        kernel = functools.partial(_block_kernel_proj, taps1=taps1, taps2=taps2,
                                   nspan=nspan)
    else:
        kernel = functools.partial(_block_kernel_identity, taps1=taps1, taps2=taps2,
                                   nspan=nspan, cout=cout)

    out = pl.pallas_call(
        kernel,
        out_shape=jax.ShapeDtypeStruct((n // nb, cout, nspan), jnp.bfloat16),
        grid=grid,
        in_specs=in_specs,
        out_specs=pl.BlockSpec((1, cout, nspan), lambda g: (g, 0, 0)),
        scratch_shapes=[pltpu.VMEM((cmid_p, 2 * _GUARD + nspan), jnp.bfloat16)],
        compiler_params=pltpu.CompilerParams(
            dimension_semantics=("parallel",),
            vmem_limit_bytes=_vmem_limit_bytes()),
    )(*args)

    # Single relayout pass back to dense NCHW (the only post-kernel XLA pass).
    out = out.reshape(n // nb, cout, nb, span).transpose(0, 2, 1, 3)
    out = out.reshape(n, cout, span)[:, :, :body]
    out = out.reshape(n, cout, ho + 2, pwo)[:, :, 1:ho + 1, 1:wo + 1]
    return out.astype(x.dtype)


# ---------------------------------------------------------------------------
# Deterministic synthetic parameters (shapes from BasicBlock.__init__)
# ---------------------------------------------------------------------------
def _fold_bn(gamma, beta, mean, var):
    scale = gamma / jnp.sqrt(var + EPS)
    return scale, beta - mean * scale


def init_params(key, in_planes, mid_planes, out_planes, stride):
    keys = jax.random.split(key, 6)

    def bn(k, c):
        k1, k2, k3, k4 = jax.random.split(k, 4)
        gamma = 1.0 + 0.1 * jax.random.normal(k1, (c,), jnp.float32)
        beta = 0.1 * jax.random.normal(k2, (c,), jnp.float32)
        mean = 0.1 * jax.random.normal(k3, (c,), jnp.float32)
        var = jax.random.uniform(k4, (c,), jnp.float32, 0.5, 1.5)
        return _fold_bn(gamma, beta, mean, var)

    p = {}
    p["w1"] = 0.2 * jax.random.normal(keys[0], (3, 3, in_planes, mid_planes), jnp.float32)
    p["s1"], p["b1"] = bn(keys[1], mid_planes)
    p["w2"] = 0.2 * jax.random.normal(keys[2], (3, 3, mid_planes, out_planes), jnp.float32)
    p["s2"], p["b2"] = bn(keys[3], out_planes)
    if stride != 1 or in_planes != out_planes:
        p["wsc"] = 0.2 * jax.random.normal(keys[4], (1, 1, in_planes, out_planes), jnp.float32)
        p["ssc"], p["bsc"] = bn(keys[5], out_planes)
    return p


# ---------------------------------------------------------------------------
# Pure-JAX reference (mirrors the kernel numerics: bf16 MXU inputs, f32 accumulate)
# ---------------------------------------------------------------------------
def reference_forward(x, params, stride):
    def conv(inp, w_hwio, scale, s):
        wf = (w_hwio * scale).astype(jnp.bfloat16)
        pad = (w_hwio.shape[0] - 1) // 2
        return jax.lax.conv_general_dilated(
            inp.astype(jnp.bfloat16), wf, (s, s), [(pad, pad), (pad, pad)],
            dimension_numbers=("NCHW", "HWIO", "NCHW"),
            preferred_element_type=jnp.float32)

    b = lambda v: v[None, :, None, None]
    h = jnp.maximum(conv(x, params["w1"], params["s1"], stride) + b(params["b1"]), 0.0)
    h = h.astype(jnp.bfloat16)
    y = conv(h, params["w2"], params["s2"], 1) + b(params["b2"])
    if "wsc" in params:
        sc = jnp.maximum(
            conv(x, params["wsc"], params["ssc"], stride) + b(params["bsc"]), 0.0)
    else:
        sc = jnp.maximum(x.astype(jnp.bfloat16).astype(jnp.float32), 0.0)
    return y + sc


# ---------------------------------------------------------------------------
if __name__ == "__main__":
    key = jax.random.PRNGKey(0)
    kx, kp1, kp2 = jax.random.split(key, 3)

    # Case 1: projection shortcut (stride=2, channels 4 -> 8).
    N, C_in, H, W = 2, 4, 16, 16
    mid, C_out, stride = 8, 8, 2
    x = jax.random.normal(kx, (N, C_in, H, W), jnp.float32)
    params = init_params(kp1, C_in, mid, C_out, stride)
    fwd = jax.jit(functools.partial(basic_block_forward, stride=stride))
    out = jax.block_until_ready(fwd(x, params))
    ref = reference_forward(x, params, stride)
    assert out.shape == (N, C_out, H // stride, W // stride)
    err = float(jnp.max(jnp.abs(out - ref)))
    assert jnp.allclose(out, ref, atol=2e-2, rtol=2e-2), f"max_abs_err={err}"

    # Case 2: identity shortcut (stride=1, in_planes == out_planes).
    params2 = init_params(kp2, C_in, C_in, C_in, 1)
    fwd2 = jax.jit(functools.partial(basic_block_forward, stride=1))
    out2 = jax.block_until_ready(fwd2(x, params2))
    ref2 = reference_forward(x, params2, 1)
    assert out2.shape == x.shape
    err2 = float(jnp.max(jnp.abs(out2 - ref2)))
    assert jnp.allclose(out2, ref2, atol=2e-2, rtol=2e-2), f"max_abs_err={err2}"

    print("KERNEL_OK")
</pallas_src>

<mosaic_0001>
module attributes {stable_mosaic.version = 11 : i64} {
  func.func @_block_kernel_proj(%arg0: i32, %arg1: memref<1x4x16x384xbf16, #tpu.memory_space<vmem>>, %arg2: memref<1x128xf32, #tpu.memory_space<vmem>>, %arg3: memref<16x144xbf16, #tpu.memory_space<vmem>>, %arg4: memref<16x1xf32, #tpu.memory_space<vmem>>, %arg5: memref<8x144xbf16, #tpu.memory_space<vmem>>, %arg6: memref<8x1xf32, #tpu.memory_space<vmem>>, %arg7: memref<1x16x128xbf16, #tpu.memory_space<vmem>>, %arg8: memref<8x16xbf16, #tpu.memory_space<vmem>>, %arg9: memref<8x1xf32, #tpu.memory_space<vmem>>, %arg10: memref<1x8x128xbf16, #tpu.memory_space<vmem>>, %arg11: memref<16x384xbf16, #tpu.memory_space<vmem>>) attributes {dimension_semantics = [#tpu.dimension_semantics<parallel>], iteration_bounds = array<i64: 2>, scalar_prefetch = 0 : i64, scratch_operands = 1 : i64, tpu.core_type = #tpu.core_type<tc>, window_params = [{transform_indices = @transform_0, window_bounds = array<i64: 1, 4, 16, 384>}, {pipeline_mode = #tpu.pipeline_mode<synchronous>, transform_indices = @transform_1, window_bounds = array<i64: 1, 128>}, {pipeline_mode = #tpu.pipeline_mode<synchronous>, transform_indices = @transform_2, window_bounds = array<i64: 16, 144>}, {pipeline_mode = #tpu.pipeline_mode<synchronous>, transform_indices = @transform_3, window_bounds = array<i64: 16, 1>}, {pipeline_mode = #tpu.pipeline_mode<synchronous>, transform_indices = @transform_4, window_bounds = array<i64: 8, 144>}, {pipeline_mode = #tpu.pipeline_mode<synchronous>, transform_indices = @transform_5, window_bounds = array<i64: 8, 1>}, {transform_indices = @transform_6, window_bounds = array<i64: 1, 16, 128>}, {pipeline_mode = #tpu.pipeline_mode<synchronous>, transform_indices = @transform_7, window_bounds = array<i64: 8, 16>}, {pipeline_mode = #tpu.pipeline_mode<synchronous>, transform_indices = @transform_8, window_bounds = array<i64: 8, 1>}, {transform_indices = @transform_9, window_bounds = array<i64: 1, 8, 128>}]} {
    %c0 = arith.constant 0 : index
    %c0_0 = arith.constant 0 : index
    %c0_1 = arith.constant 0 : index
    %c117 = arith.constant 117 : index
    %0 = vector.load %arg1[%c0, %c0_0, %c0_1, %c117] : memref<1x4x16x384xbf16, #tpu.memory_space<vmem>>, vector<1x1x16x128xbf16>
    %1 = vector.shape_cast %0 : vector<1x1x16x128xbf16> to vector<16x128xbf16>
    %c0_2 = arith.constant 0 : index
    %c1 = arith.constant 1 : index
    %c0_3 = arith.constant 0 : index
    %c117_4 = arith.constant 117 : index
    %2 = vector.load %arg1[%c0_2, %c1, %c0_3, %c117_4] : memref<1x4x16x384xbf16, #tpu.memory_space<vmem>>, vector<1x1x16x128xbf16>
    %3 = vector.shape_cast %2 : vector<1x1x16x128xbf16> to vector<16x128xbf16>
    %c0_5 = arith.constant 0 : index
    %c0_6 = arith.constant 0 : index
    %c0_7 = arith.constant 0 : index
    %c118 = arith.constant 118 : index
    %4 = vector.load %arg1[%c0_5, %c0_6, %c0_7, %c118] : memref<1x4x16x384xbf16, #tpu.memory_space<vmem>>, vector<1x1x16x128xbf16>
    %5 = vector.shape_cast %4 : vector<1x1x16x128xbf16> to vector<16x128xbf16>
    %c0_8 = arith.constant 0 : index
    %c2 = arith.constant 2 : index
    %c0_9 = arith.constant 0 : index
    %c117_10 = arith.constant 117 : index
    %6 = vector.load %arg1[%c0_8, %c2, %c0_9, %c117_10] : memref<1x4x16x384xbf16, #tpu.memory_space<vmem>>, vector<1x1x16x128xbf16>
    %7 = vector.shape_cast %6 : vector<1x1x16x128xbf16> to vector<16x128xbf16>
    %c0_11 = arith.constant 0 : index
    %c3 = arith.constant 3 : index
    %c0_12 = arith.constant 0 : index
    %c117_13 = arith.constant 117 : index
    %8 = vector.load %arg1[%c0_11, %c3, %c0_12, %c117_13] : memref<1x4x16x384xbf16, #tpu.memory_space<vmem>>, vector<1x1x16x128xbf16>
    %9 = vector.shape_cast %8 : vector<1x1x16x128xbf16> to vector<16x128xbf16>
    %c0_14 = arith.constant 0 : index
    %c2_15 = arith.constant 2 : index
    %c0_16 = arith.constant 0 : index
    %c118_17 = arith.constant 118 : index
    %10 = vector.load %arg1[%c0_14, %c2_15, %c0_16, %c118_17] : memref<1x4x16x384xbf16, #tpu.memory_space<vmem>>, vector<1x1x16x128xbf16>
    %11 = vector.shape_cast %10 : vector<1x1x16x128xbf16> to vector<16x128xbf16>
    %c0_18 = arith.constant 0 : index
    %c0_19 = arith.constant 0 : index
    %c0_20 = arith.constant 0 : index
    %c127 = arith.constant 127 : index
    %12 = vector.load %arg1[%c0_18, %c0_19, %c0_20, %c127] : memref<1x4x16x384xbf16, #tpu.memory_space<vmem>>, vector<1x1x16x128xbf16>
    %13 = vector.shape_cast %12 : vector<1x1x16x128xbf16> to vector<16x128xbf16>
    %c0_21 = arith.constant 0 : index
    %c1_22 = arith.constant 1 : index
    %c0_23 = arith.constant 0 : index
    %c127_24 = arith.constant 127 : index
    %14 = vector.load %arg1[%c0_21, %c1_22, %c0_23, %c127_24] : memref<1x4x16x384xbf16, #tpu.memory_space<vmem>>, vector<1x1x16x128xbf16>
    %15 = vector.shape_cast %14 : vector<1x1x16x128xbf16> to vector<16x128xbf16>
    %c0_25 = arith.constant 0 : index
    %c0_26 = arith.constant 0 : index
    %c0_27 = arith.constant 0 : index
    %c128 = arith.constant 128 : index
    %16 = vector.load %arg1[%c0_25, %c0_26, %c0_27, %c128] : memref<1x4x16x384xbf16, #tpu.memory_space<vmem>>, vector<1x1x16x128xbf16>
    %17 = vector.shape_cast %16 : vector<1x1x16x128xbf16> to vector<16x128xbf16>
    %18 = tpu.concatenate %1, %3, %5, %7, %9, %11, %13, %15, %17 in 0 : vector<16x128xbf16>, vector<16x128xbf16>, vector<16x128xbf16>, vector<16x128xbf16>, vector<16x128xbf16>, vector<16x128xbf16>, vector<16x128xbf16>, vector<16x128xbf16>, vector<16x128xbf16> -> vector<144x128xbf16>
    %c0_28 = arith.constant 0 : index
    %c0_29 = arith.constant 0 : index
    %19 = vector.load %arg3[%c0_28, %c0_29] : memref<16x144xbf16, #tpu.memory_space<vmem>>, vector<16x144xbf16>
    %cst = arith.constant dense<0.000000e+00> : vector<16x128xf32>
    %20 = tpu.matmul %19, %18, %cst {dimension_numbers = #tpu.dot_dimension_numbers<[1], [0], [0], [1], [0, 0, 1, 1], [], []>} : vector<16x144xbf16>, vector<144x128xbf16>, vector<16x128xf32> -> vector<16x128xf32>
    %c0_30 = arith.constant 0 : index
    %c0_31 = arith.constant 0 : index
    %21 = vector.load %arg4[%c0_30, %c0_31] : memref<16x1xf32, #tpu.memory_space<vmem>>, vector<16x1xf32>
    %22 = vector.broadcast %21 : vector<16x1xf32> to vector<16x128xf32>
    %23 = arith.addf %20, %22 : vector<16x128xf32>
    %cst_32 = arith.constant 0.000000e+00 : f32
    %24 = vector.broadcast %cst_32 : f32 to vector<16x128xf32>
    %25 = arith.maximumf %23, %24 : vector<16x128xf32>
    %c0_33 = arith.constant 0 : index
    %c0_34 = arith.constant 0 : index
    %26 = vector.load %arg2[%c0_33, %c0_34] : memref<1x128xf32, #tpu.memory_space<vmem>>, vector<1x128xf32>
    %27 = vector.broadcast %26 : vector<1x128xf32> to vector<16x128xf32>
    %28 = arith.mulf %25, %27 : vector<16x128xf32>
    %cst_35 = arith.constant 0.000000e+00 : bf16
    %29 = vector.broadcast %cst_35 : bf16 to vector<16x128xbf16>
    %c0_36 = arith.constant 0 : index
    %c0_37 = arith.constant 0 : index
    %30 = vector.load %arg11[%c0_36, %c0_37] : memref<16x384xbf16, #tpu.memory_space<vmem>>, vector<16x128xbf16>
    tpu.vector_store %arg11[%c0_36, %c0_37], %29 {strides = array<i32>} : memref<16x384xbf16, #tpu.memory_space<vmem>>, vector<16x128xbf16>,
    %c0_38 = arith.constant 0 : index
    %c256 = arith.constant 256 : index
    %31 = vector.load %arg11[%c0_38, %c256] : memref<16x384xbf16, #tpu.memory_space<vmem>>, vector<16x128xbf16>
    tpu.vector_store %arg11[%c0_38, %c256], %29 {strides = array<i32>} : memref<16x384xbf16, #tpu.memory_space<vmem>>, vector<16x128xbf16>,
    %32 = arith.truncf %28 : vector<16x128xf32> to vector<16x128xbf16>
    %c0_39 = arith.constant 0 : index
    %c128_40 = arith.constant 128 : index
    %33 = vector.load %arg11[%c0_39, %c128_40] : memref<16x384xbf16, #tpu.memory_space<vmem>>, vector<16x128xbf16>
    tpu.vector_store %arg11[%c0_39, %c128_40], %32 {strides = array<i32>} : memref<16x384xbf16, #tpu.memory_space<vmem>>, vector<16x128xbf16>,
    %c0_41 = arith.constant 0 : index
    %c117_42 = arith.constant 117 : index
    %34 = vector.load %arg11[%c0_41, %c117_42] : memref<16x384xbf16, #tpu.memory_space<vmem>>, vector<16x128xbf16>
    %c0_43 = arith.constant 0 : index
    %c118_44 = arith.constant 118 : index
    %35 = vector.load %arg11[%c0_43, %c118_44] : memref<16x384xbf16, #tpu.memory_space<vmem>>, vector<16x128xbf16>
    %c0_45 = arith.constant 0 : index
    %c119 = arith.constant 119 : index
    %36 = vector.load %arg11[%c0_45, %c119] : memref<16x384xbf16, #tpu.memory_space<vmem>>, vector<16x128xbf16>
    %c0_46 = arith.constant 0 : index
    %c127_47 = arith.constant 127 : index
    %37 = vector.load %arg11[%c0_46, %c127_47] : memref<16x384xbf16, #tpu.memory_space<vmem>>, vector<16x128xbf16>
    %c0_48 = arith.constant 0 : index
    %c128_49 = arith.constant 128 : index
    %38 = vector.load %arg11[%c0_48, %c128_49] : memref<16x384xbf16, #tpu.memory_space<vmem>>, vector<16x128xbf16>
    %c0_50 = arith.constant 0 : index
    %c129 = arith.constant 129 : index
    %39 = vector.load %arg11[%c0_50, %c129] : memref<16x384xbf16, #tpu.memory_space<vmem>>, vector<16x128xbf16>
    %c0_51 = arith.constant 0 : index
    %c137 = arith.constant 137 : index
    %40 = vector.load %arg11[%c0_51, %c137] : memref<16x384xbf16, #tpu.memory_space<vmem>>, vector<16x128xbf16>
    %c0_52 = arith.constant 0 : index
    %c138 = arith.constant 138 : index
    %41 = vector.load %arg11[%c0_52, %c138] : memref<16x384xbf16, #tpu.memory_space<vmem>>, vector<16x128xbf16>
    %c0_53 = arith.constant 0 : index
    %c139 = arith.constant 139 : index
    %42 = vector.load %arg11[%c0_53, %c139] : memref<16x384xbf16, #tpu.memory_space<vmem>>, vector<16x128xbf16>
    %43 = tpu.concatenate %34, %35, %36, %37, %38, %39, %40, %41, %42 in 0 : vector<16x128xbf16>, vector<16x128xbf16>, vector<16x128xbf16>, vector<16x128xbf16>, vector<16x128xbf16>, vector<16x128xbf16>, vector<16x128xbf16>, vector<16x128xbf16>, vector<16x128xbf16> -> vector<144x128xbf16>
    %c0_54 = arith.constant 0 : index
    %c0_55 = arith.constant 0 : index
    %44 = vector.load %arg5[%c0_54, %c0_55] : memref<8x144xbf16, #tpu.memory_space<vmem>>, vector<8x144xbf16>
    %cst_56 = arith.constant dense<0.000000e+00> : vector<8x128xf32>
    %45 = tpu.matmul %44, %43, %cst_56 {dimension_numbers = #tpu.dot_dimension_numbers<[1], [0], [0], [1], [0, 0, 1, 1], [], []>} : vector<8x144xbf16>, vector<144x128xbf16>, vector<8x128xf32> -> vector<8x128xf32>
    %c0_57 = arith.constant 0 : index
    %c0_58 = arith.constant 0 : index
    %46 = vector.load %arg6[%c0_57, %c0_58] : memref<8x1xf32, #tpu.memory_space<vmem>>, vector<8x1xf32>
    %47 = vector.broadcast %46 : vector<8x1xf32> to vector<8x128xf32>
    %48 = arith.addf %45, %47 : vector<8x128xf32>
    %c0_59 = arith.constant 0 : index
    %c0_60 = arith.constant 0 : index
    %49 = vector.load %arg8[%c0_59, %c0_60] : memref<8x16xbf16, #tpu.memory_space<vmem>>, vector<8x16xbf16>
    %c0_61 = arith.constant 0 : index
    %c0_62 = arith.constant 0 : index
    %c0_63 = arith.constant 0 : index
    %50 = vector.load %arg7[%c0_61, %c0_62, %c0_63] : memref<1x16x128xbf16, #tpu.memory_space<vmem>>, vector<1x16x128xbf16>
    %51 = vector.shape_cast %50 : vector<1x16x128xbf16> to vector<16x128xbf16>
    %cst_64 = arith.constant dense<0.000000e+00> : vector<8x128xf32>
    %52 = tpu.matmul %49, %51, %cst_64 {dimension_numbers = #tpu.dot_dimension_numbers<[1], [0], [0], [1], [0, 0, 1, 1], [], []>} : vector<8x16xbf16>, vector<16x128xbf16>, vector<8x128xf32> -> vector<8x128xf32>
    %c0_65 = arith.constant 0 : index
    %c0_66 = arith.constant 0 : index
    %53 = vector.load %arg9[%c0_65, %c0_66] : memref<8x1xf32, #tpu.memory_space<vmem>>, vector<8x1xf32>
    %54 = vector.broadcast %53 : vector<8x1xf32> to vector<8x128xf32>
    %55 = arith.addf %52, %54 : vector<8x128xf32>
    %cst_67 = arith.constant 0.000000e+00 : f32
    %56 = vector.broadcast %cst_67 : f32 to vector<8x128xf32>
    %57 = arith.maximumf %55, %56 : vector<8x128xf32>
    %58 = arith.addf %48, %57 : vector<8x128xf32>
    %59 = arith.truncf %58 : vector<8x128xf32> to vector<8x128xbf16>
    %c0_68 = arith.constant 0 : index
    %c0_69 = arith.constant 0 : index
    %c0_70 = arith.constant 0 : index
    %60 = vector.load %arg10[%c0_68, %c0_69, %c0_70] : memref<1x8x128xbf16, #tpu.memory_space<vmem>>, vector<1x8x128xbf16>
    %61 = vector.shape_cast %60 : vector<1x8x128xbf16> to vector<8x128xbf16>
    %62 = vector.shape_cast %59 : vector<8x128xbf16> to vector<1x8x128xbf16>
    tpu.vector_store %arg10[%c0_68, %c0_69, %c0_70], %62 {strides = array<i32>} : memref<1x8x128xbf16, #tpu.memory_space<vmem>>, vector<1x8x128xbf16>,
    return
  }
  func.func @transform_0(%arg0: i32) -> (i32, i32, i32, i32) {
    %c0_i32 = arith.constant 0 : i32
    %c0_i32_0 = arith.constant 0 : i32
    %c0_i32_1 = arith.constant 0 : i32
    %c0_i32_2 = arith.constant 0 : i32
    return %arg0, %c0_i32, %c0_i32_0, %c0_i32_1 : i32, i32, i32, i32
  }
  func.func @transform_1(%arg0: i32) -> (i32, i32) {
    %c0_i32 = arith.constant 0 : i32
    %c0_i32_0 = arith.constant 0 : i32
    %c0_i32_1 = arith.constant 0 : i32
    return %c0_i32, %c0_i32_0 : i32, i32
  }
  func.func @transform_2(%arg0: i32) -> (i32, i32) {
    %c0_i32 = arith.constant 0 : i32
    %c0_i32_0 = arith.constant 0 : i32
    %c0_i32_1 = arith.constant 0 : i32
    return %c0_i32, %c0_i32_0 : i32, i32
  }
  func.func @transform_3(%arg0: i32) -> (i32, i32) {
    %c0_i32 = arith.constant 0 : i32
    %c0_i32_0 = arith.constant 0 : i32
    %c0_i32_1 = arith.constant 0 : i32
    return %c0_i32, %c0_i32_0 : i32, i32
  }
  func.func @transform_4(%arg0: i32) -> (i32, i32) {
    %c0_i32 = arith.constant 0 : i32
    %c0_i32_0 = arith.constant 0 : i32
    %c0_i32_1 = arith.constant 0 : i32
    return %c0_i32, %c0_i32_0 : i32, i32
  }
  func.func @transform_5(%arg0: i32) -> (i32, i32) {
    %c0_i32 = arith.constant 0 : i32
    %c0_i32_0 = arith.constant 0 : i32
    %c0_i32_1 = arith.constant 0 : i32
    return %c0_i32, %c0_i32_0 : i32, i32
  }
  func.func @transform_6(%arg0: i32) -> (i32, i32, i32) {
    %c0_i32 = arith.constant 0 : i32
    %c0_i32_0 = arith.constant 0 : i32
    %c0_i32_1 = arith.constant 0 : i32
    return %arg0, %c0_i32, %c0_i32_0 : i32, i32, i32
  }
  func.func @transform_7(%arg0: i32) -> (i32, i32) {
    %c0_i32 = arith.constant 0 : i32
    %c0_i32_0 = arith.constant 0 : i32
    %c0_i32_1 = arith.constant 0 : i32
    return %c0_i32, %c0_i32_0 : i32, i32
  }
  func.func @transform_8(%arg0: i32) -> (i32, i32) {
    %c0_i32 = arith.constant 0 : i32
    %c0_i32_0 = arith.constant 0 : i32
    %c0_i32_1 = arith.constant 0 : i32
    return %c0_i32, %c0_i32_0 : i32, i32
  }
  func.func @transform_9(%arg0: i32) -> (i32, i32, i32) {
    %c0_i32 = arith.constant 0 : i32
    %c0_i32_0 = arith.constant 0 : i32
    %c0_i32_1 = arith.constant 0 : i32
    return %arg0, %c0_i32, %c0_i32_0 : i32, i32, i32
  }
}

</mosaic_0001>

<bundles_post_ra>
// kernel: basic_block_forward.1
= control target key start
LH: loop header
LB: loop body
LE: loop exit
PB: predicated region body
PF: predicated region fallthrough
CT: control target
= control target key end

     0   :  { %s1001_s30 = smov 0   ;;  %s1176_s0 = inlined_call_operand.vmem [shape: bf16[2,4,16,384], index: 0, kind: input, shape index: {}]   ;;  %s1177_s1 = inlined_call_operand.vmem [shape: f32[1,128], index: 1, kind: input, shape index: {}]   ;;  %s1178_s2 = inlined_call_operand.vmem [shape: bf16[16,144], index: 2, kind: input, shape index: {}]   ;;  %s1179_s3 = inlined_call_operand.vmem [shape: f32[16,1], index: 3, kind: input, shape index: {}]   ;;  %s1180_s4 = inlined_call_operand.vmem [shape: bf16[8,144], index: 4, kind: input, shape index: {}]   ;;  %s1181_s5 = inlined_call_operand.vmem [shape: f32[8,1], index: 5, kind: input, shape index: {}]   ;;  %s1182_s6 = inlined_call_operand.vmem [shape: bf16[2,16,128], index: 6, kind: input, shape index: {}]   ;;  %s1183_s7 = inlined_call_operand.vmem [shape: bf16[8,16], index: 7, kind: input, shape index: {}]   ;;  %s1184_s8 = inlined_call_operand.vmem [shape: f32[8,1], index: 8, kind: input, shape index: {}]   ;;  %s1185_s9 = inlined_call_operand.vmem [shape: bf16[2,8,128], index: 9, kind: output, shape index: {}]  }
   0x1 LB: > { %s845_s10 = sadd.s32 4294967295, %s937_s30   ;;  %p849_p0 = scmp.ge.s32.totalorder %s937_s30, 1  ;;  %s937_s30 = sphi %s1001_s30, %s19_s30  }
   0x2   : > { %p297_p1 = scmp.lt.s32.totalorder %s937_s30, 3 }
   0x4   : > { %p298_p2 = pnand %p849_p0, %p297_p1 }
   0x5   : > { %p337_p3 = scmp.lt.s32.totalorder (!%p298_p2), %s845_s10, 1  ;;  %s939_s15 = smov (!%p298_p2), 127   ;;  %v942_v7 = vmov (!%p298_p2), 0   ;;  %vm385_vm0 = vcmask (!%p298_p2), 1039360   ;;  %vm412_vm1 = vcmask (!%p298_p2), 965632   ;;  %vm483_vm2 = vcmask (!%p298_p2), 89088  }
   0x6   : > { %301 = sbr.rel (%p298_p2) target bundleno = 985 (0x3d9), region = 56  ;;  %s940_s16 = smov (!%p298_p2), 118   ;;  %505 = vmatprep.subr.bf16.mxu0 (!%p298_p2), %v942_v7  ;;  %910 = vset.pattern.permute.xlu0 (!%p298_p2), %v942_v7  ;;  %v927_v22 = vld [vmem:[%s1178_s2 + $0x4] ss:$8 sps:$4 sm:$0xff] (!%p298_p2)   ;;  %vm501_vm3 = vcmask (!%p298_p2), 130048   ;;  %v945_v52 = vmov (!%p298_p2), 0.0  }
   0x7   : > { %s941_s17 = smov (!%p298_p2), 117   ;;  %s943_s18 = smov (!%p298_p2), 11   ;;  %678 = vmatprep.subr.bf16.mxu1 (!%p298_p2), %v942_v7  ;;  %911 = vset.pattern.permute.xlu1 (!%p298_p2), %v942_v7  ;;  %v428_v30 = vld [vmem:[%s1179_s3] sm:$0xff] (!%p298_p2)  ;;  %v429_v31 = vld [vmem:[%s1179_s3 + $0x8] sm:$0xff] (!%p298_p2)  ;;  %vm946_vm4 = vmmov (!%p298_p2), 0   ;;  %vm576_vm5 = vcmask (!%p298_p2), 1031168  }
   0x8   : > { %871 = vmatprep.mubr.msk.bf16.mxu0 (!%p298_p2), %vm501_vm3, %v927_v22  ;;  %v925_v51 = vld [vmem:[%s1178_s2] ss:$8 sps:$4 sm:$0xff] (!%p298_p2)   ;;  %s944_s27 = smov (!%p298_p2), 126   ;;  %s947_s21 = smov (!%p298_p2), 116   ;;  %vm591_vm6 = vcmask (!%p298_p2), 949248   ;;  %vm597_vm7 = vcmask (!%p298_p2), 883712  }
   0x9   : > { %v718_v54 = vld [vmem:[%s1183_s7] sm:$0xf] (!%p298_p2)  ;;  %s948_s22 = smov (!%p298_p2), 108   ;;  %s949_s23 = smov (!%p298_p2), 107   ;;  %vm603_vm8 = vcmask (!%p298_p2), 875520   ;;  %vm609_vm9 = vcmask (!%p298_p2), 867328  }
   0xa   : > { %s950_s24 = smov (!%p298_p2), 106   ;;  %v1131_v22 = vld [vmem:[%s1180_s4] sm:$0xff] (!%p298_p2) }
   0xd   : > { %s1187_s10 = smov (!%p337_p3, %s845_s10), 1 }
   0xe   : > { %s889_s11 = smul.u32 96, %s1187_s10  ;;  %s880_s28 = sshll.u32 %s1187_s10, 3 }
   0xf   : > { %s346_s12 = scalar_lea.vmem %s1182_s6, %s880_s28 }
  0x10   : > { %s1015_s14 = scalar_lea.vmem %s1176_s0, %s889_s11  ;;  %v928_v53 = vld [vmem:[%s346_s12] sm:$0xff]  }
  0x11   : > { %v912_v0 = vld [vmem:[%s1015_s14] ss:$12 sps:$4 sm:$0xff]   ;;  %v914_v1 = vld [vmem:[%s1015_s14 + $0x4] ss:$12 sps:$4 sm:$0xff]   ;;  %v918_v5 = vld [vmem:[%s1015_s14 + $0x1c] ss:$12 sps:$4 sm:$0xff]  }
  0x12   : > { %381 = vrot.lane.b32.xlu0 %v912_v0, %s939_s15  ;;  %v915_v2 = vld [vmem:[%s1015_s14 + $0x30] ss:$12 sps:$4 sm:$0xff]   ;;  %v917_v3 = vld [vmem:[%s1015_s14 + $0x34] ss:$12 sps:$4 sm:$0xff]   ;;  %v920_v4 = vld [vmem:[%s1015_s14 + $0x18] ss:$12 sps:$4 sm:$0xff]  }
  0x13   : > { %403 = vrot.lane.b32.xlu1 %v915_v2, %s939_s15  ;;  %v921_v6 = vld [vmem:[%s1015_s14 + $0x4] ss:$12 sps:$4 sm:$0xff]   ;;  %v922_v14 = vld [vmem:[%s1015_s14 + $0x4c] ss:$12 sps:$4 sm:$0xff]   ;;  %v924_v15 = vld [vmem:[%s1015_s14 + $0x48] ss:$12 sps:$4 sm:$0xff]  }
  0x16   : > { %383 = vrot.lane.b32.xlu0 %v914_v1, %s939_s15 }
  0x17   : > { %405 = vrot.lane.b32.xlu1 %v917_v3, %s939_s15 }
  0x1a   : > { %408 = vrot.lane.b32.xlu0 %v912_v0, %s940_s16 }
  0x1b   : > { %410 = vrot.lane.b32.xlu1 %v914_v1, %s940_s16 }
  0x1e   : > { %414 = vrot.lane.b32.xlu0 %v920_v4, %s940_s16 }
  0x1f   : > { %416 = vrot.lane.b32.xlu1 %v918_v5, %s940_s16 }
  0x22   : > { %424 = vrot.lane.b32.xlu0 %v921_v6, %s941_s17 }
  0x23   : > { %449 = vrot.lane.b32.xlu1 %v912_v0, %s943_s18  ;;  %v872_v0 = vld [vmem:[%s1177_s1] ss:$0 sm:$0xff] }
  0x26   : > { %451 = vrot.lane.b32.xlu0 %v914_v1, %s943_s18 }
  0x27   : > { %453 = vrot.lane.b32.xlu1 %v920_v4, %s943_s18 }
  0x2a   : > { %455 = vrot.lane.b32.xlu0 %v918_v5, %s943_s18 }
  0x84   : > { %v382_v8 = vpop.permute.xlu0 %381 }
  0x85   : > { %v404_v9 = vpop.permute.xlu1 %403 }
  0x88   : > { %v384_v10 = vpop.permute.xlu0 %383 }
  0x89   : > { %459 = vrot.lane.b32.xlu0 %v384_v10, %s943_s18  ;;  %v386_v11 = vsel %vm385_vm0, %v382_v8, %v384_v10  ;;  %v406_v12 = vpop.permute.xlu1 %405 }
  0x8a   : > { %457 = vrot.lane.b32.xlu1 %v386_v11, %s943_s18  ;;  %v407_v20 = vsel %vm385_vm0, %v404_v9, %v406_v12 }
  0x8c   : > { %v409_v13 = vpop.permute.xlu0 %408 }
  0x8d   : > { %463 = vrot.lane.b32.xlu0 %v917_v3, %s943_s18  ;;  %v411_v16 = vpop.permute.xlu1 %410 }
  0x8e   : > { %461 = vrot.lane.b32.xlu1 %v915_v2, %s943_s18  ;;  %v413_v23 = vsel %vm412_vm1, %v409_v13, %v411_v16 }
  0x90   : > { %v415_v17 = vpop.permute.xlu0 %414 }
  0x91   : > { %467 = vrot.lane.b32.xlu0 %v922_v14, %s943_s18  ;;  %v417_v18 = vpop.permute.xlu1 %416 }
  0x92   : > { %465 = vrot.lane.b32.xlu1 %v924_v15, %s943_s18  ;;  %v418_v27 = vsel %vm412_vm1, %v415_v17, %v417_v18 }
  0x94   : > { %v425_v19 = vpop.permute.xlu0 %424 }
  0x95   : > { %471 = vrot.lane.b32.xlu0 %v406_v12, %s943_s18  ;;  %v450_v21 = vpop.permute.xlu1 %449 }
  0x96   : > { %469 = vrot.lane.b32.xlu1 %v407_v20, %s943_s18 }
  0x98   : > { %v452_v24 = vpop.permute.xlu0 %451 }
  0x99   : > { %475 = vrot.lane.b32.xlu0 %v411_v16, %s943_s18  ;;  %v484_v25 = vsel %vm483_vm2, %v450_v21, %v452_v24  ;;  %v454_v26 = vpop.permute.xlu1 %453 }
  0x9a   : > { %473 = vrot.lane.b32.xlu1 %v413_v23, %s943_s18  ;;  %506 = vmatpush1.bf16.msra.mxu0 %v484_v25  ;;  %v874_v23 = vcombine.high %v1131_v22, %v1131_v22 }
  0x9b   : > { %507 = vmatprep.subr.bf16.mxu0 %v942_v7 }
  0x9c   : > { %v456_v28 = vpop.permute.xlu0 %455  ;;  %875 = vmatprep.mubr.msk.bf16.mxu1 %vm501_vm3, %v874_v23 }
  0x9d   : > { %479 = vrot.lane.b32.xlu0 %v417_v18, %s943_s18  ;;  %v485_v29 = vsel %vm483_vm2, %v454_v26, %v456_v28 }
  0x9e   : > { %477 = vrot.lane.b32.xlu1 %v418_v27, %s943_s18  ;;  %508 = vmatpush1.bf16.msra.mxu0 %v485_v29 }
  0x9f   : > { %509 = vmatprep.subr.bf16.mxu0 %v942_v7 }
  0xa1   : > { %432 = vperm.xlu0 %910, %v428_v30  }
  0xa2   : > { %481 = vrot.lane.b32.xlu1 %v425_v19, %s943_s18 }
  0xa6   : > { %437 = vperm.xlu1 %911, %v429_v31  }
  0xaa   : > { %567 = vrot.lane.b32.xlu1 %v942_v7, %s939_s15 }
  0xae   : > { %572 = vrot.lane.b32.xlu1 %v942_v7, %s944_s27 }
  0xb2   : > { %578 = vrot.lane.b32.xlu1 %v942_v7, %s940_s16 }
  0xfb   : > { %v460_v32 = vpop.permute.xlu0 %459 }
  0xfc   : > { %v458_v33 = vpop.permute.xlu1 %457 }
  0xfd   : > { %v486_v34 = vsel %vm483_vm2, %v458_v33, %v460_v32  ;;  %v721_v33 = vld [vmem:[%s1184_s8] sm:$0xff] }
  0xfe   : > { %510 = vmatpush1.bf16.msra.mxu0 %v486_v34 }
  0xff   : > { %v464_v35 = vpop.permute.xlu0 %463  ;;  %511 = vmatprep.subr.bf16.mxu0 %v942_v7 }
 0x100   : > { %v462_v36 = vpop.permute.xlu1 %461 }
 0x101   : > { %v487_v37 = vsel %vm483_vm2, %v462_v36, %v464_v35 }
 0x102   : > { %512 = vmatpush1.bf16.msra.mxu0 %v487_v37 }
 0x103   : > { %v468_v38 = vpop.permute.xlu0 %467  ;;  %513 = vmatprep.subr.bf16.mxu0 %v942_v7 }
 0x104   : > { %v466_v39 = vpop.permute.xlu1 %465 }
 0x105   : > { %v488_v40 = vsel %vm483_vm2, %v466_v39, %v468_v38  ;;  %v612_v38 = vld [vmem:[%s1181_s5] sm:$0xff] }
 0x106   : > { %514 = vmatpush1.bf16.msra.mxu0 %v488_v40 }
 0x107   : > { %v472_v41 = vpop.permute.xlu0 %471  ;;  %515 = vmatprep.subr.bf16.mxu0 %v942_v7 }
 0x108   : > { %v470_v42 = vpop.permute.xlu1 %469 }
 0x109   : > { %v489_v43 = vsel %vm483_vm2, %v470_v42, %v472_v41 }
 0x10a   : > { %516 = vmatpush1.bf16.msra.mxu0 %v489_v43 }
 0x10b   : > { %v476_v44 = vpop.permute.xlu0 %475  ;;  %517 = vmatprep.subr.bf16.mxu0 %v942_v7 }
 0x10c   : > { %v474_v45 = vpop.permute.xlu1 %473 }
 0x10d   : > { %v490_v46 = vsel %vm483_vm2, %v474_v45, %v476_v44 }
 0x10e   : > { %518 = vmatpush1.bf16.msra.mxu0 %v490_v46 }
 0x10f   : > { %v480_v47 = vpop.permute.xlu0 %479  ;;  %519 = vmatprep.subr.bf16.mxu0 %v942_v7 }
 0x110   : > { %v478_v48 = vpop.permute.xlu1 %477 }
 0x111   : > { %v491_v49 = vsel %vm483_vm2, %v478_v48, %v480_v47 }
 0x112   : > { %520 = vmatpush1.bf16.msra.mxu0 %v491_v49 }
 0x113   : > { %521 = vmatprep.subr.bf16.mxu0 %v942_v7 }
 0x114   : > { %v482_v50 = vpop.permute.xlu1 %481 }
 0x116   : > { %522 = vmatpush1.bf16.msra.mxu0 %v482_v50 }
 0x117   : > { %883 = vmatprep.subr.bf16.mxu0 %v945_v52 }
 0x119   : > { %538 = vmatmul.mubr.bf16.vlgmr.msra.gmra.mrb[0].mxu0 %v925_v51 }
 0x11a   : > { %885 = vmatprep.mubr.msk.bf16.mxu0 %vm946_vm4, %v945_v52  ;;  %884 = vmatpush3.bf16.msra.mxu0 %v928_v53 }
 0x120   : > { %v433_v55 = vpop.permute.xlu0 %432 }
 0x121   : > { %886 = vmatmul.mubr.msk.bf16.vlgmr.msra.gmra.mrb[4].mxu0 %vm501_vm3, %v718_v54 }
 0x125   : > { %v438_v57 = vpop.permute.xlu1 %437 }
 0x129   : > { %v568_v5 = vpop.permute.xlu1 %567 }
 0x12d   : > { %v573_v6 = vpop.permute.xlu1 %572 }
 0x131   : > { %v579_v8 = vpop.permute.xlu1 %578 }
 0x1ec   : > { %v539_v56 = vpop.f32.mrb[0].mxu0 }
 0x1ed   : > { %v540_v58 = vadd.f32 %v539_v56, %v433_v55  ;;  %v541_v59 = vpop.f32.mrb[1].mxu0 }
 0x1ee   : > { %v542_v60 = vpop.f32.mrb[2].mxu0 }
 0x1ef   : > { %v546_v61 = vmax.f32 %v540_v58, 0.0  ;;  %v543_v62 = vadd.f32 %v542_v60, %v438_v57  ;;  %v544_v63 = vpop.f32.mrb[3].mxu0 }
 0x1f1   : > { %v547_v1 = vmax.f32 %v543_v62, 0.0  ;;  %v555_v2 = vmul.f32 %v872_v0, %v546_v61  ;;  %v873_v61 = vcombine.low %v1131_v22, %v1131_v22 }
 0x1f3   : > { %v556_v3 = vmul.f32 %v872_v0, %v547_v1 }
 0x1f4   : > { %v1138_v26 = vpop.f32.mrb[4].mxu0 }
 0x1f5   : > { %v559_v4 = vpack.c.bf16 %v556_v3, %v555_v2  ;;  %v887_v28 = vpop.f32.mrb[5].mxu0 }
 0x1f6   : > { %v773_v29 = vpop.f32.mrb[6].mxu0 }
 0x1f7   : > { %583 = vrot.lane.b32.xlu1 %v559_v4, %s941_s17  ;;  %569 = vrot.lane.b32.xlu0 %v559_v4, %s939_s15  ;;  %v888_v31 = vpop.f32.mrb[7].mxu0 }
 0x1fb   : > { %589 = vrot.lane.b32.xlu1 %v942_v7, %s947_s21  ;;  %574 = vrot.lane.b32.xlu0 %v559_v4, %s944_s27 }
 0x1ff   : > { %595 = vrot.lane.b32.xlu1 %v942_v7, %s948_s22  ;;  %580 = vrot.lane.b32.xlu0 %v559_v4, %s940_s16 }
 0x203   : > { %601 = vrot.lane.b32.xlu1 %v942_v7, %s949_s23  ;;  %587 = vrot.lane.b32.xlu0 %v559_v4, %s947_s21 }
 0x207   : > { %607 = vrot.lane.b32.xlu1 %v942_v7, %s950_s24  ;;  %593 = vrot.lane.b32.xlu0 %v559_v4, %s948_s22 }
 0x20b   : > { %626 = vrot.lane.b32.xlu1 %v559_v4, %s943_s18  ;;  %599 = vrot.lane.b32.xlu0 %v559_v4, %s949_s23 }
 0x20f   : > { %605 = vrot.lane.b32.xlu0 %v559_v4, %s950_s24 }
 0x213   : > { %624 = vrot.lane.b32.xlu0 %v942_v7, %s943_s18 }
 0x269   : > { %v584_v9 = vpop.permute.xlu1 %583  ;;  %v570_v10 = vpop.permute.xlu0 %569 }
 0x26a   : > { %630 = vrot.lane.b32.xlu1 %v570_v10, %s943_s18  ;;  %v571_v11 = vsel %vm385_vm0, %v568_v5, %v570_v10 }
 0x26b   : > { %628 = vrot.lane.b32.xlu0 %v571_v11, %s943_s18 }
 0x26d   : > { %v590_v12 = vpop.permute.xlu1 %589  ;;  %v575_v13 = vpop.permute.xlu0 %574 }
 0x26e   : > { %634 = vrot.lane.b32.xlu1 %v575_v13, %s943_s18  ;;  %v577_v14 = vsel %vm576_vm5, %v573_v6, %v575_v13 }
 0x26f   : > { %632 = vrot.lane.b32.xlu0 %v577_v14, %s943_s18 }
 0x271   : > { %v581_v15 = vpop.permute.xlu0 %580  ;;  %v596_v17 = vpop.permute.xlu1 %595 }
 0x272   : > { %638 = vrot.lane.b32.xlu1 %v581_v15, %s943_s18  ;;  %v582_v16 = vsel %vm412_vm1, %v579_v8, %v581_v15 }
 0x273   : > { %636 = vrot.lane.b32.xlu0 %v582_v16, %s943_s18 }
 0x275   : > { %v588_v18 = vpop.permute.xlu0 %587  ;;  %v602_v19 = vpop.permute.xlu1 %601 }
 0x276   : > { %642 = vrot.lane.b32.xlu1 %v588_v18, %s943_s18  ;;  %v592_v21 = vsel %vm591_vm6, %v588_v18, %v590_v12 }
 0x277   : > { %640 = vrot.lane.b32.xlu0 %v584_v9, %s943_s18 }
 0x279   : > { %v594_v20 = vpop.permute.xlu0 %593  ;;  %v608_v27 = vpop.permute.xlu1 %607 }
 0x27a   : > { %646 = vrot.lane.b32.xlu1 %v594_v20, %s943_s18  ;;  %v598_v25 = vsel %vm597_vm7, %v594_v20, %v596_v17 }
 0x27b   : > { %644 = vrot.lane.b32.xlu0 %v592_v21, %s943_s18 }
 0x27d   : > { %v600_v24 = vpop.permute.xlu0 %599  ;;  %v627_v34 = vpop.permute.xlu1 %626 }
 0x27e   : > { %650 = vrot.lane.b32.xlu1 %v600_v24, %s943_s18  ;;  %v604_v32 = vsel %vm603_vm8, %v600_v24, %v602_v19 }
 0x27f   : > { %648 = vrot.lane.b32.xlu0 %v598_v25, %s943_s18 }
 0x281   : > { %v606_v30 = vpop.permute.xlu0 %605 }
 0x282   : > { %654 = vrot.lane.b32.xlu1 %v606_v30, %s943_s18  ;;  %v610_v36 = vsel %vm609_vm9, %v606_v30, %v608_v27 }
 0x283   : > { %652 = vrot.lane.b32.xlu0 %v604_v32, %s943_s18 }
 0x285   : > { %v625_v35 = vpop.permute.xlu0 %624 }
 0x286   : > { %724 = vperm.xlu1 %911, %v721_v33   ;;  %v658_v37 = vsel %vm483_vm2, %v625_v35, %v627_v34 }
 0x287   : > { %656 = vrot.lane.b32.xlu0 %v610_v36, %s943_s18  ;;  %679 = vmatpush1.bf16.msra.mxu1 %v658_v37  ;;  %s853_s18 = sshll.u32 %s1187_s10, 2 }
 0x288   : > { %680 = vmatprep.subr.bf16.mxu1 %v942_v7  ;;  %s350_s11 = scalar_lea.vmem %s1185_s9, %s853_s18 }
 0x28b   : > { %615 = vperm.xlu0 %910, %v612_v38  }
 0x2dc   : > { %v631_v39 = vpop.permute.xlu1 %630 }
 0x2dd   : > { %v629_v40 = vpop.permute.xlu0 %628 }
 0x2de   : > { %v659_v41 = vsel %vm483_vm2, %v629_v40, %v631_v39 }
 0x2df   : > { %681 = vmatpush1.bf16.msra.mxu1 %v659_v41 }
 0x2e0   : > { %v635_v42 = vpop.permute.xlu1 %634  ;;  %682 = vmatprep.subr.bf16.mxu1 %v942_v7 }
 0x2e1   : > { %v633_v43 = vpop.permute.xlu0 %632 }
 0x2e2   : > { %v660_v44 = vsel %vm483_vm2, %v633_v43, %v635_v42 }
 0x2e3   : > { %683 = vmatpush1.bf16.msra.mxu1 %v660_v44 }
 0x2e4   : > { %v639_v45 = vpop.permute.xlu1 %638  ;;  %684 = vmatprep.subr.bf16.mxu1 %v942_v7 }
 0x2e5   : > { %v637_v46 = vpop.permute.xlu0 %636 }
 0x2e6   : > { %v661_v47 = vsel %vm483_vm2, %v637_v46, %v639_v45 }
 0x2e7   : > { %685 = vmatpush1.bf16.msra.mxu1 %v661_v47 }
 0x2e8   : > { %v643_v48 = vpop.permute.xlu1 %642  ;;  %686 = vmatprep.subr.bf16.mxu1 %v942_v7 }
 0x2e9   : > { %v641_v49 = vpop.permute.xlu0 %640 }
 0x2eb   : > { %687 = vmatpush1.bf16.msra.mxu1 %v641_v49 }
 0x2ec   : > { %688 = vmatprep.subr.bf16.mxu1 %v942_v7  ;;  %v647_v50 = vpop.permute.xlu1 %646 }
 0x2ed   : > { %v645_v51 = vpop.permute.xlu0 %644 }
 0x2ee   : > { %v662_v52 = vsel %vm483_vm2, %v643_v48, %v645_v51 }
 0x2ef   : > { %689 = vmatpush1.bf16.msra.mxu1 %v662_v52 }
 0x2f0   : > { %690 = vmatprep.subr.bf16.mxu1 %v942_v7  ;;  %v651_v55 = vpop.permute.xlu1 %650 }
 0x2f1   : > { %v649_v53 = vpop.permute.xlu0 %648 }
 0x2f2   : > { %v663_v54 = vsel %vm483_vm2, %v647_v50, %v649_v53 }
 0x2f3   : > { %691 = vmatpush1.bf16.msra.mxu1 %v663_v54 }
 0x2f4   : > { %692 = vmatprep.subr.bf16.mxu1 %v942_v7  ;;  %v655_v58 = vpop.permute.xlu1 %654 }
 0x2f5   : > { %v653_v56 = vpop.permute.xlu0 %652 }
 0x2f6   : > { %v664_v57 = vsel %vm483_vm2, %v651_v55, %v653_v56 }
 0x2f7   : > { %693 = vmatpush1.bf16.msra.mxu1 %v664_v57 }
 0x2f8   : > { %694 = vmatprep.subr.bf16.mxu1 %v942_v7 }
 0x2f9   : > { %v657_v59 = vpop.permute.xlu0 %656 }
 0x2fa   : > { %v665_v60 = vsel %vm483_vm2, %v655_v58, %v657_v59 }
 0x2fb   : > { %695 = vmatpush1.bf16.msra.mxu1 %v665_v60 }
 0x2fe   : > { %711 = vmatmul.mubr.bf16.vlgmr.msra.gmra.mrb[0].mxu1 %v873_v61 }
 0x305   : > { %v725_v62 = vpop.permute.xlu1 %724 }
 0x306   : > { %v771_v63 = vadd.f32 %v1138_v26, %v725_v62 }
 0x308   : > { %v776_v2 = vmax.f32 %v771_v63, 0.0 }
 0x30a   : > { %v616_v0 = vpop.permute.xlu0 %615 }
 0x3d1   : > { %v712_v1 = vpop.f32.mrb[0].mxu1 }
 0x3d2   : > { %v713_v3 = vadd.f32 %v712_v1, %v616_v0  ;;  %v714_v4 = vpop.f32.mrb[1].mxu1 }
 0x3d3   : > { %v715_v5 = vpop.f32.mrb[2].mxu1 }
 0x3d4   : > { %v777_v7 = vadd.f32 %v776_v2, %v713_v3  ;;  %v716_v6 = vpop.f32.mrb[3].mxu1 }
 0x3d6   : > { %v778_v8 = vpack.c.bf16 %v777_v7, %v777_v7 }
 0x3d8   : > { %779 = vst [vmem:[%s350_s11] sm:$0xf] %v778_v8 }
 0x3d9 PF: > { %s19_s30 = sadd.s32 1, %s937_s30  }
 0x3da   : > { %p16_p4 = scmp.ge.s32.totalorder %s19_s30, 4  }
 0x3dc   :  { %18 = sbr.rel (!%p16_p4) target bundleno = 1 (0x1), region = 92 }

</bundles_post_ra>
